<compile_context>
chip_gen: v5e
topology: v5e:2x2
jax: 0.10.0
libtpu: 0.0.40
codegen_flags: <defaults>
</compile_context>

<pallas_src>
from typing import NamedTuple

import jax
import jax.numpy as jnp
from jax import lax
from jax.experimental import pallas as pl
from jax.experimental.pallas import tpu as pltpu

_LANE = 128
_SUBLANE = 8


def _round_up(x, m):
    return ((x + m - 1) // m) * m


# --------------------------------------------------------------------------- #
# Kernel
# --------------------------------------------------------------------------- #
def _mlp_kernel(x_ref, w_ref, b_ref, o_ref):
    """Fused padded MLP forward for one batch tile.

    x_ref: (TB, P)   compute dtype (bf16 by default) activation tile
    w_ref: (L, P, P) compute dtype stacked zero-padded weights, (in, out) layout
    b_ref: (L, 1, P) f32 stacked zero-padded biases
    o_ref: (TB, P)   output tile (lane-dense, P % 128 == 0)
    """
    n_layers_total = w_ref.shape[0]
    cdt = w_ref.dtype

    def layer(h, idx, relu):
        # MXU matmul in compute dtype, f32 accumulation; bias add / ReLU in f32.
        y = jnp.dot(h.astype(cdt), w_ref[idx],
                    preferred_element_type=jnp.float32) + b_ref[idx]
        return jnp.maximum(y, 0.0) if relu else y

    h = x_ref[...]
    if n_layers_total <= 8:
        # Small L: static unroll (best LLO scheduling visibility).
        for i in range(n_layers_total):
            h = layer(h, i, relu=(i < n_layers_total - 1))
    else:
        # Large L: keep code size / live ranges flat with a dynamic-index loop.
        h = layer(h, 0, relu=True)
        h = lax.fori_loop(1, n_layers_total - 1,
                          lambda i, a: layer(a, i, True), h)
        h = layer(h, n_layers_total - 1, relu=False)

    o_ref[...] = h.astype(o_ref.dtype)  # unmasked full-vreg store (P % 128 == 0)


# --------------------------------------------------------------------------- #
# One-time parameter preparation (hoisted out of the forward path)
# --------------------------------------------------------------------------- #
class PreparedParams(NamedTuple):
    w_stack: jax.Array   # (L, P, P) compute dtype, zero-padded, (in, out) layout
    b_stack: jax.Array   # (L, 1, P) f32, zero-padded
    in_dim: int
    out_dim: int
    p: int


def prepare_letter_to_word_params(weights, biases, *, compute_dtype=jnp.bfloat16):
    """Pad every layer to a common (P, P), stack into one slab, cast once.

    compute_dtype=jnp.bfloat16 is a deliberate numerics choice (native MXU
    dtype, half the weight DMA bytes); pass jnp.float32 for exact f32 parity
    with the PyTorch forward. Zero padding preserves the math exactly: padded
    input columns hit zero weight rows, padded output columns get zero weights
    + zero bias and stay zero through ReLU.
    """
    n_layers_total = len(weights)
    in_dim = weights[0].shape[0]
    out_dim = weights[-1].shape[1]
    dims = [in_dim] + [w.shape[1] for w in weights]
    p = _round_up(max(dims), _LANE)

    w_stack = jnp.zeros((n_layers_total, p, p), jnp.float32)
    b_stack = jnp.zeros((n_layers_total, 1, p), jnp.float32)
    for i, (w, b) in enumerate(zip(weights, biases)):
        w_stack = w_stack.at[i, : w.shape[0], : w.shape[1]].set(w)
        b_stack = b_stack.at[i, :, : b.shape[1]].set(b)
    w_stack = w_stack.astype(compute_dtype)

    return PreparedParams(jax.device_put(w_stack), jax.device_put(b_stack),
                          in_dim, out_dim, p)


# --------------------------------------------------------------------------- #
# Forward
# --------------------------------------------------------------------------- #
def letter_to_word_forward(letters, params: PreparedParams, *,
                           batch_tile=512, core_parallel=False,
                           out_dtype=jnp.float32):
    """letters: (B, 26*n_letters). Returns (B, n_possible_words) in out_dtype.

    core_parallel=True maps the batch grid axis to pltpu.CORE_PARALLEL (use on
    v7x when the batch spans >= 2 tiles to engage both TensorCores; it is left
    off by default so single-TensorCore chips are unaffected).
    out_dtype=jnp.bfloat16 halves the output HBM write stream if downstream
    consumers tolerate bf16 logits.
    """
    w_stack, b_stack, in_dim, out_dim, p = params
    batch = letters.shape[0]
    assert letters.shape[1] == in_dim
    n_layers_total = w_stack.shape[0]
    compute_dtype = w_stack.dtype

    # Batch tile: always a multiple of the sublane packing for compute_dtype
    # (16 rows for bf16, 8 for f32) so caller-supplied batch_tile can never
    # produce an unaligned partial block.
    sub = _SUBLANE * (4 // jnp.dtype(compute_dtype).itemsize)
    tb = _round_up(min(batch, batch_tile), sub)
    b_pad = _round_up(batch, tb)
    grid = (b_pad // tb,)

    # Single pad of the (already narrow) compute-dtype activations; no
    # zeros+scatter HBM round trip.
    x = letters.astype(compute_dtype)
    x = jnp.pad(x, ((0, b_pad - batch), (0, p - in_dim)))

    if core_parallel and grid[0] >= 2:
        dim_sem = (pltpu.CORE_PARALLEL,)   # v7x: shard batch tiles across TCs
    else:
        dim_sem = ("arbitrary",)

    out_pad = pl.pallas_call(
        _mlp_kernel,
        out_shape=jax.ShapeDtypeStruct((b_pad, p), out_dtype),
        grid_spec=pltpu.PrefetchScalarGridSpec(
            num_scalar_prefetch=0,
            grid=grid,
            in_specs=[
                # activations: tiled over batch (pipelined by Pallas)
                pl.BlockSpec((tb, p), lambda i: (i, 0)),
                # weights / biases: constant index map -> VMEM-resident;
                # single-buffered since the block never changes.
                pl.BlockSpec((n_layers_total, p, p), lambda i: (0, 0, 0),
                             pipeline_mode=pl.Buffered(1)),
                pl.BlockSpec((n_layers_total, 1, p), lambda i: (0, 0, 0),
                             pipeline_mode=pl.Buffered(1)),
            ],
            out_specs=pl.BlockSpec((tb, p), lambda i: (i, 0)),
        ),
        compiler_params=pltpu.CompilerParams(dimension_semantics=dim_sem),
    )(x, w_stack, b_stack)

    # Slice away padded rows/columns outside the kernel (store stays lane-dense).
    return out_pad[:batch, :out_dim]


# --------------------------------------------------------------------------- #
# Init + references + self-test
# --------------------------------------------------------------------------- #
def init_letter_to_word_params(key, n_letters, n_possible_words, n_layers, size):
    """Deterministic init mirroring create_network shapes (weights stored (in, out))."""
    dims = [26 * n_letters] + [size] * n_layers + [n_possible_words]
    weights, biases = [], []
    for i in range(len(dims) - 1):
        key, kw, kb = jax.random.split(key, 3)
        bound = 1.0 / jnp.sqrt(dims[i])
        weights.append(
            jax.random.uniform(kw, (dims[i], dims[i + 1]), jnp.float32, -bound, bound))
        biases.append(
            jax.random.uniform(kb, (1, dims[i + 1]), jnp.float32, -bound, bound))
    return weights, biases


def _reference_forward_bf16(letters, weights, biases):
    """Pure-JAX reference with the kernel's numerics (bf16 operands, f32 acc)."""
    h = letters.astype(jnp.bfloat16)
    for i, (w, b) in enumerate(zip(weights, biases)):
        h = jnp.dot(h.astype(jnp.bfloat16), w.astype(jnp.bfloat16),
                    preferred_element_type=jnp.float32) + b
        if i < len(weights) - 1:
            h = jnp.maximum(h, 0.0)
    return h


def _reference_forward_f32(letters, weights, biases):
    h = letters
    for i, (w, b) in enumerate(zip(weights, biases)):
        h = h @ w + b
        if i < len(weights) - 1:
            h = jnp.maximum(h, 0.0)
    return h


if __name__ == "__main__":
    # Small shapes consistent with the module.
    n_letters = 4            # input dim = 26 * 4 = 104
    n_possible_words = 50
    n_layers = 2
    size = 64
    batch = 8

    key = jax.random.PRNGKey(0)
    key, kx = jax.random.split(key)
    letters = jax.random.normal(kx, (batch, 26 * n_letters), jnp.float32)

    weights, biases = init_letter_to_word_params(
        key, n_letters, n_possible_words, n_layers, size)

    # Prepared ONCE (padding / stacking / bf16 cast hoisted out of the forward).
    params = prepare_letter_to_word_params(weights, biases,
                                           compute_dtype=jnp.bfloat16)

    out = letter_to_word_forward(letters, params)
    out = jax.block_until_ready(out)
    assert out.shape == (batch, n_possible_words)

    # Matches a reference using identical numerics (bf16 MXU operands, f32 acc).
    ref_bf16 = _reference_forward_bf16(letters, weights, biases)
    assert jnp.allclose(out, ref_bf16, atol=1e-3, rtol=1e-3)

    # And stays close to the full-f32 PyTorch-equivalent forward (bf16 rounding only).
    ref_f32 = _reference_forward_f32(letters, weights, biases)
    assert jnp.allclose(out, ref_f32, atol=5e-2, rtol=5e-2)

    # TODO(synk): update()/CrossEntropyLoss/Adam training step not implemented
    # (only the forward pass is kernelized).
    print("KERNEL_OK")
</pallas_src>

<mosaic_0001>
module attributes {stable_mosaic.version = 11 : i64} {
  func.func @_mlp_kernel(%arg0: i32, %arg1: memref<16x128xbf16, #tpu.memory_space<vmem>>, %arg2: memref<3x128x128xbf16, #tpu.memory_space<vmem>>, %arg3: memref<3x1x128xf32, #tpu.memory_space<vmem>>, %arg4: memref<16x128xf32, #tpu.memory_space<vmem>>) attributes {dimension_semantics = [#tpu.dimension_semantics<arbitrary>], iteration_bounds = array<i64: 1>, scalar_prefetch = 0 : i64, scratch_operands = 0 : i64, tpu.core_type = #tpu.core_type<tc>, window_params = [{transform_indices = @transform_0, window_bounds = array<i64: 16, 128>}, {pipeline_mode = #tpu.pipeline_mode<synchronous>, transform_indices = @transform_1, window_bounds = array<i64: 3, 128, 128>}, {pipeline_mode = #tpu.pipeline_mode<synchronous>, transform_indices = @transform_2, window_bounds = array<i64: 3, 1, 128>}, {transform_indices = @transform_3, window_bounds = array<i64: 16, 128>}]} {
    %c0 = arith.constant 0 : index
    %c0_0 = arith.constant 0 : index
    %0 = vector.load %arg1[%c0, %c0_0] : memref<16x128xbf16, #tpu.memory_space<vmem>>, vector<16x128xbf16>
    %c0_1 = arith.constant 0 : index
    %c0_2 = arith.constant 0 : index
    %c0_3 = arith.constant 0 : index
    %1 = vector.load %arg2[%c0_1, %c0_2, %c0_3] : memref<3x128x128xbf16, #tpu.memory_space<vmem>>, vector<1x128x128xbf16>
    %2 = vector.shape_cast %1 : vector<1x128x128xbf16> to vector<128x128xbf16>
    %cst = arith.constant dense<0.000000e+00> : vector<16x128xf32>
    %3 = tpu.matmul %0, %2, %cst {dimension_numbers = #tpu.dot_dimension_numbers<[1], [0], [0], [1], [0, 0, 1, 1], [], []>} : vector<16x128xbf16>, vector<128x128xbf16>, vector<16x128xf32> -> vector<16x128xf32>
    %c0_4 = arith.constant 0 : index
    %c0_5 = arith.constant 0 : index
    %c0_6 = arith.constant 0 : index
    %4 = vector.load %arg3[%c0_4, %c0_5, %c0_6] : memref<3x1x128xf32, #tpu.memory_space<vmem>>, vector<1x1x128xf32>
    %5 = vector.shape_cast %4 : vector<1x1x128xf32> to vector<1x128xf32>
    %6 = vector.broadcast %5 : vector<1x128xf32> to vector<16x128xf32>
    %7 = arith.addf %3, %6 : vector<16x128xf32>
    %cst_7 = arith.constant 0.000000e+00 : f32
    %8 = vector.broadcast %cst_7 : f32 to vector<16x128xf32>
    %9 = arith.maximumf %7, %8 : vector<16x128xf32>
    %10 = arith.truncf %9 : vector<16x128xf32> to vector<16x128xbf16>
    %c1 = arith.constant 1 : index
    %c0_8 = arith.constant 0 : index
    %c0_9 = arith.constant 0 : index
    %11 = vector.load %arg2[%c1, %c0_8, %c0_9] : memref<3x128x128xbf16, #tpu.memory_space<vmem>>, vector<1x128x128xbf16>
    %12 = vector.shape_cast %11 : vector<1x128x128xbf16> to vector<128x128xbf16>
    %cst_10 = arith.constant dense<0.000000e+00> : vector<16x128xf32>
    %13 = tpu.matmul %10, %12, %cst_10 {dimension_numbers = #tpu.dot_dimension_numbers<[1], [0], [0], [1], [0, 0, 1, 1], [], []>} : vector<16x128xbf16>, vector<128x128xbf16>, vector<16x128xf32> -> vector<16x128xf32>
    %c1_11 = arith.constant 1 : index
    %c0_12 = arith.constant 0 : index
    %c0_13 = arith.constant 0 : index
    %14 = vector.load %arg3[%c1_11, %c0_12, %c0_13] : memref<3x1x128xf32, #tpu.memory_space<vmem>>, vector<1x1x128xf32>
    %15 = vector.shape_cast %14 : vector<1x1x128xf32> to vector<1x128xf32>
    %16 = vector.broadcast %15 : vector<1x128xf32> to vector<16x128xf32>
    %17 = arith.addf %13, %16 : vector<16x128xf32>
    %cst_14 = arith.constant 0.000000e+00 : f32
    %18 = vector.broadcast %cst_14 : f32 to vector<16x128xf32>
    %19 = arith.maximumf %17, %18 : vector<16x128xf32>
    %20 = arith.truncf %19 : vector<16x128xf32> to vector<16x128xbf16>
    %c2 = arith.constant 2 : index
    %c0_15 = arith.constant 0 : index
    %c0_16 = arith.constant 0 : index
    %21 = vector.load %arg2[%c2, %c0_15, %c0_16] : memref<3x128x128xbf16, #tpu.memory_space<vmem>>, vector<1x128x128xbf16>
    %22 = vector.shape_cast %21 : vector<1x128x128xbf16> to vector<128x128xbf16>
    %cst_17 = arith.constant dense<0.000000e+00> : vector<16x128xf32>
    %23 = tpu.matmul %20, %22, %cst_17 {dimension_numbers = #tpu.dot_dimension_numbers<[1], [0], [0], [1], [0, 0, 1, 1], [], []>} : vector<16x128xbf16>, vector<128x128xbf16>, vector<16x128xf32> -> vector<16x128xf32>
    %c2_18 = arith.constant 2 : index
    %c0_19 = arith.constant 0 : index
    %c0_20 = arith.constant 0 : index
    %24 = vector.load %arg3[%c2_18, %c0_19, %c0_20] : memref<3x1x128xf32, #tpu.memory_space<vmem>>, vector<1x1x128xf32>
    %25 = vector.shape_cast %24 : vector<1x1x128xf32> to vector<1x128xf32>
    %26 = vector.broadcast %25 : vector<1x128xf32> to vector<16x128xf32>
    %27 = arith.addf %23, %26 : vector<16x128xf32>
    %c0_21 = arith.constant 0 : index
    %c0_22 = arith.constant 0 : index
    %28 = vector.load %arg4[%c0_21, %c0_22] : memref<16x128xf32, #tpu.memory_space<vmem>>, vector<16x128xf32>
    tpu.vector_store %arg4[%c0_21, %c0_22], %27 {strides = array<i32>} : memref<16x128xf32, #tpu.memory_space<vmem>>, vector<16x128xf32>,
    return
  }
  func.func @transform_0(%arg0: i32) -> (i32, i32) {
    %c0_i32 = arith.constant 0 : i32
    %c0_i32_0 = arith.constant 0 : i32
    return %arg0, %c0_i32 : i32, i32
  }
  func.func @transform_1(%arg0: i32) -> (i32, i32, i32) {
    %c0_i32 = arith.constant 0 : i32
    %c0_i32_0 = arith.constant 0 : i32
    %c0_i32_1 = arith.constant 0 : i32
    %c0_i32_2 = arith.constant 0 : i32
    return %c0_i32, %c0_i32_0, %c0_i32_1 : i32, i32, i32
  }
  func.func @transform_2(%arg0: i32) -> (i32, i32, i32) {
    %c0_i32 = arith.constant 0 : i32
    %c0_i32_0 = arith.constant 0 : i32
    %c0_i32_1 = arith.constant 0 : i32
    %c0_i32_2 = arith.constant 0 : i32
    return %c0_i32, %c0_i32_0, %c0_i32_1 : i32, i32, i32
  }
  func.func @transform_3(%arg0: i32) -> (i32, i32) {
    %c0_i32 = arith.constant 0 : i32
    %c0_i32_0 = arith.constant 0 : i32
    return %arg0, %c0_i32 : i32, i32
  }
}

</mosaic_0001>

<bundles_post_ra>
// kernel: tpu_custom_call.1
= control target key start
LH: loop header
LB: loop body
LE: loop exit
PB: predicated region body
PF: predicated region fallthrough
CT: control target
= control target key end

     0   :  { %8 = vsyncpa [#allocation3], 0  ;;  %s630_s0 = inlined_call_operand.hbm [shape: bf16[16,128], index: 0, kind: input, shape index: {}]   ;;  %s631_s1 = inlined_call_operand.hbm [shape: bf16[3,128,128], index: 1, kind: input, shape index: {}]   ;;  %s632_s2 = inlined_call_operand.hbm [shape: f32[3,1,128], index: 2, kind: input, shape index: {}]   ;;  %s633_s3 = inlined_call_operand.hbm [shape: f32[16,128], index: 3, kind: output, shape index: {}]  }
   0x1   :  { %9 = vsyncpa [#allocation6], 0 }
   0x2   :  { %10 = vsyncpa [#allocation4], 0  ;;  %s28_s14 = sshll.u32 %s631_s1, 4  ;;  %s588_s15 = smov [#allocation5]   ;;  %s29_s14 = int_to_ptr.hbm [resolvable:$true] %s28_s14 }
   0x3   :  { %s30_s16 = sshll.u32 %s588_s15, 4  ;;  %s15_s19 = sshll.u32 %s630_s0, 4  ;;  %s31_s16 = int_to_ptr.vmem [resolvable:$true] %s30_s16  ;;  %s16_s19 = int_to_ptr.hbm [resolvable:$true] %s15_s19 }
   0x4   :  { %s589_s20 = smov 64   ;;  %s590_s21 = smov 4  }
   0x5   :  { %36 = dma.hbm_to_vmem [thread:$0]  %s29_s14, 3072, %s31_s16, [#allocation6], %s589_s20, %s589_s20, %s590_s21  }
   0x6   :  { %s591_s22 = smov [#allocation2]   ;;  %s41_s26 = sshll.u32 %s632_s2, 4  ;;  %s42_s26 = int_to_ptr.hbm [resolvable:$true] %s41_s26 }
   0x7   :  { %s17_s23 = sshll.u32 %s591_s22, 4  ;;  %s592_s1 = smov [#allocation7]   ;;  %s18_s23 = int_to_ptr.vmem [resolvable:$true] %s17_s23 }
   0x8   :  { %23 = dma.hbm_to_vmem [thread:$0]  %s16_s19, 128, %s18_s23, [#allocation3], %s589_s20, %s589_s20, %s590_s21  }
   0x9   :  { %s43_s27 = sshll.u32 %s592_s1, 4  ;;  %s593_s28 = smov 16   ;;  %s44_s27 = int_to_ptr.vmem [resolvable:$true] %s43_s27 }
   0xa   :  { %s594_s29 = smov 1  }
   0xb   :  { %49 = dma.hbm_to_vmem [thread:$0]  %s42_s26, 48, %s44_s27, [#allocation6], %s593_s28, %s593_s28, %s594_s29  }
   0xc   :  { %582 = dma.done.wait [#allocation3], 128  }
   0xd   :  { %583 = vsyncadd [#allocation3], 4294967168 }
   0xe   :  { %584 = dma.done.wait [#allocation6], 3120  }
   0xf   :  { %585 = vsyncadd [#allocation6], 4294964176  ;;  %v456_v0 = vld [vmem:[#allocation5 + $0x38] sm:$0xff]  ;;  %v455_v1 = vld [vmem:[#allocation5 + $0x30] sm:$0xff]  ;;  %s595_s0 = smov [#allocation8]   ;;  %s334_s5 = sshll.u32 %s633_s3, 4  ;;  %s335_s5 = int_to_ptr.hbm [resolvable:$true] %s334_s5 }
  0x10   :  { %138 = vmatpush.bf16.msra.mxu0 %v456_v0  ;;  %v464_v2 = vld [vmem:[#allocation5 + $0x78] sm:$0xff]  ;;  %v463_v3 = vld [vmem:[#allocation5 + $0x70] sm:$0xff]  ;;  %v454_v4 = vld [vmem:[#allocation5 + $0x28] sm:$0xff]  ;;  %s332_s2 = sshll.u32 %s595_s0, 4  ;;  %s596_s6 = smov 128   ;;  %s333_s2 = int_to_ptr.vmem [resolvable:$true] %s332_s2 }
  0x11   :  { %225 = vmatpush.bf16.msra.mxu1 %v464_v2  ;;  %v462_v5 = vld [vmem:[#allocation5 + $0x68] sm:$0xff]  ;;  %v453_v6 = vld [vmem:[#allocation5 + $0x20] sm:$0xff]  ;;  %v452_v8 = vld [vmem:[#allocation5 + $0x18] sm:$0xff]  ;;  %s597_s7 = smov 8  }
  0x12   :  { %v461_v7 = vld [vmem:[#allocation5 + $0x60] sm:$0xff]  ;;  %v451_v9 = vld [vmem:[#allocation5 + $0x10] sm:$0xff]  ;;  %v450_v10 = vld [vmem:[#allocation5 + $0x8] sm:$0xff] }
  0x13   :  { %v449_v11 = vld [vmem:[#allocation5] sm:$0xff]  ;;  %v448_v12 = vld [vmem:[#allocation2] sm:$0xff]  ;;  %v459_v14 = vld [vmem:[#allocation5 + $0x50] sm:$0xff] }
  0x14   :  { %139 = vmatpush.bf16.msra.mxu0 %v455_v1  ;;  %v460_v13 = vld [vmem:[#allocation5 + $0x58] sm:$0xff]  ;;  %v458_v15 = vld [vmem:[#allocation5 + $0x48] sm:$0xff]  ;;  %v457_v16 = vld [vmem:[#allocation5 + $0x40] sm:$0xff] }
  0x15   :  { %226 = vmatpush.bf16.msra.mxu1 %v463_v3  ;;  %v472_v17 = vld [vmem:[#allocation5 + $0xb8] sm:$0xff]  ;;  %v471_v18 = vld [vmem:[#allocation5 + $0xb0] sm:$0xff]  ;;  %v470_v19 = vld [vmem:[#allocation5 + $0xa8] sm:$0xff] }
  0x16   :  { %312 = vmatpush.bf16.msra.mxu2 %v472_v17  ;;  %v469_v20 = vld [vmem:[#allocation5 + $0xa0] sm:$0xff]  ;;  %v468_v29 = vld [vmem:[#allocation5 + $0x98] sm:$0xff]  ;;  %v467_v30 = vld [vmem:[#allocation5 + $0x90] sm:$0xff] }
  0x17   :  { %v483_v22 = vld [vmem:[#allocation7] ss:$0 sm:$0xff]  ;;  %v466_v31 = vld [vmem:[#allocation5 + $0x88] sm:$0xff]  ;;  %v484_v34 = vld [vmem:[#allocation7 + $0x1] ss:$0 sm:$0xff] }
  0x18   :  { %140 = vmatpush.bf16.msra.mxu0 %v454_v4  ;;  %v465_v32 = vld [vmem:[#allocation5 + $0x80] sm:$0xff] }
  0x19   :  { %227 = vmatpush.bf16.msra.mxu1 %v462_v5  ;;  %v485_v41 = vld [vmem:[#allocation7 + $0x2] ss:$0 sm:$0xff] }
  0x1a   :  { %313 = vmatpush.bf16.msra.mxu2 %v471_v18 }
  0x1c   :  { %141 = vmatpush.bf16.msra.mxu0 %v453_v6 }
  0x1d   :  { %228 = vmatpush.bf16.msra.mxu1 %v461_v7 }
  0x1e   :  { %314 = vmatpush.bf16.msra.mxu2 %v470_v19 }
  0x20   :  { %142 = vmatpush.bf16.msra.mxu0 %v452_v8 }
  0x21   :  { %229 = vmatpush.bf16.msra.mxu1 %v460_v13 }
  0x22   :  { %315 = vmatpush.bf16.msra.mxu2 %v469_v20 }
  0x24   :  { %143 = vmatpush.bf16.msra.mxu0 %v451_v9 }
  0x25   :  { %230 = vmatpush.bf16.msra.mxu1 %v459_v14 }
  0x26   :  { %316 = vmatpush.bf16.msra.mxu2 %v468_v29 }
  0x28   :  { %144 = vmatpush.bf16.msra.mxu0 %v450_v10 }
  0x29   :  { %231 = vmatpush.bf16.msra.mxu1 %v458_v15 }
  0x2a   :  { %317 = vmatpush.bf16.msra.mxu2 %v467_v30 }
  0x2c   :  { %145 = vmatpush.bf16.msra.mxu0 %v449_v11 }
  0x2d   :  { %232 = vmatpush.bf16.msra.mxu1 %v457_v16 }
  0x2e   :  { %318 = vmatpush.bf16.msra.mxu2 %v466_v31 }
  0x2f   :  { %146 = vmatmul.bf16.vlgmr.msra.gmra.mxu0 %v448_v12 }
  0x32   :  { %319 = vmatpush.bf16.msra.mxu2 %v465_v32 }
  0xac   :  { %v147_v21 = vpop.f32.mrf.mxu0 }
  0xad   :  { %v148_v23 = vadd.f32 %v483_v22, %v147_v21 }
  0xaf   :  { %v152_v26 = vmax.f32 %v148_v23, 0.0 }
  0xb4   :  { %v149_v24 = vpop.f32.mrf.mxu0 }
  0xb5   :  { %v150_v25 = vadd.f32 %v483_v22, %v149_v24 }
  0xb7   :  { %v153_v27 = vmax.f32 %v150_v25, 0.0 }
  0xb9   :  { %v154_v28 = vpack.c.bf16 %v153_v27, %v152_v26 }
  0xbb   :  { %233 = vmatmul.bf16.vlgmr.msra.gmra.mxu1 %v154_v28 }
 0x138   :  { %v234_v33 = vpop.f32.mrf.mxu1 }
 0x139   :  { %v235_v35 = vadd.f32 %v484_v34, %v234_v33 }
 0x13b   :  { %v239_v38 = vmax.f32 %v235_v35, 0.0 }
 0x140   :  { %v236_v36 = vpop.f32.mrf.mxu1 }
 0x141   :  { %v237_v37 = vadd.f32 %v484_v34, %v236_v36 }
 0x143   :  { %v240_v39 = vmax.f32 %v237_v37, 0.0 }
 0x145   :  { %v241_v40 = vpack.c.bf16 %v240_v39, %v239_v38 }
 0x147   :  { %320 = vmatmul.bf16.vlgmr.msra.gmra.mxu2 %v241_v40 }
 0x1ca   :  { %v321_v42 = vpop.f32.mrf.mxu2 }
 0x1cb   :  { %v322_v43 = vadd.f32 %v485_v41, %v321_v42 }
 0x1cd   :  { %326 = vst [vmem:[#allocation8] sm:$0xff] %v322_v43 }
 0x1d2   :  { %v323_v44 = vpop.f32.mrf.mxu2 }
 0x1d3   :  { %v324_v45 = vadd.f32 %v485_v41, %v323_v44 }
 0x1d5   :  { %327 = vst [vmem:[#allocation8 + $0x8] sm:$0xff] %v324_v45 }
 0x1d6   :  { %340 = dma.vmem_to_hbm [thread:$0]  %s333_s2, 256, %s335_s5, [#allocation4], %s596_s6, %s596_s6, %s597_s7  }
 0x1d7   :  { %586 = dma.done.wait [#allocation4], 256  }
 0x1d8   :  { %587 = vsyncadd [#allocation4], 4294967040 }
 0x1d9   :  { %345 = vsyncpa [#allocation3], 1 }
 0x1da   :  { %346 = vsyncpa [#allocation6], 1 }
 0x1db   :  { %347 = vsyncpa [#allocation4], 1 }

</bundles_post_ra>
